<compile_context>
chip_gen: v5e
topology: v5e:2x2
jax: 0.10.0
libtpu: 0.0.40
codegen_flags: <defaults>
</compile_context>

<pallas_src>
import functools

import jax
import jax.numpy as jnp
from jax.experimental import pallas as pl
from jax.experimental.pallas import tpu as pltpu


def _round_up(x, m):
    return (x + m - 1) // m * m


def mlp_kernel(x_ref,
               w1_ref, b1_ref,
               w2_ref, b2_ref,
               w3_ref, b3_ref,
               w4_ref, b4_ref,
               o_ref):
    # x (and weights) may be streamed in bf16; accumulate every dot in f32 and
    # do all elementwise work in f32.
    x = x_ref[...]

    # fc1 + ReLU
    h = jnp.dot(x, w1_ref[...], preferred_element_type=jnp.float32) + b1_ref[...]
    h = jnp.maximum(h, 0.0)

    # fc2 + ReLU  (cast activations to the weight stream dtype only for the MXU)
    h = jnp.dot(h.astype(w2_ref.dtype), w2_ref[...],
                preferred_element_type=jnp.float32) + b2_ref[...]
    h = jnp.maximum(h, 0.0)

    # fc3 + ReLU
    h = jnp.dot(h.astype(w3_ref.dtype), w3_ref[...],
                preferred_element_type=jnp.float32) + b3_ref[...]
    h = jnp.maximum(h, 0.0)

    # fc4 + log_softmax over the class axis
    logits = jnp.dot(h.astype(w4_ref.dtype), w4_ref[...],
                     preferred_element_type=jnp.float32) + b4_ref[...]
    m = jnp.max(logits, axis=-1, keepdims=True)
    shifted = logits - m
    lse = jnp.log(jnp.sum(jnp.exp(shifted), axis=-1, keepdims=True))
    o_ref[...] = shifted - lse


@functools.partial(jax.jit, static_argnames=("tile_b", "stream_dtype"))
def nn4_forward(x, params, *, tile_b=1024, stream_dtype=jnp.float32):
    """Forward pass of NN4_No_Dropout.

    x:       [B, 267] float32
    params:  (w1, b1, w2, b2, w3, b3, w4, b4); weights stored [in, out],
             biases stored [1, out].
    tile_b:  batch rows per grid step (clamped to the padded batch; multiple of 8).
    stream_dtype: dtype used to stream x and the weights from HBM
             (jnp.float32 or jnp.bfloat16).  Accumulation is always f32.
    """
    w1, b1, w2, b2, w3, b3, w4, b4 = params
    B, f_in = x.shape
    n_classes = w4.shape[1]

    # --- Lane-pad the input feature axis (267 -> 384) with zeros. ---
    k_pad = _round_up(f_in, 128)
    if k_pad != f_in:
        x = jnp.pad(x, ((0, 0), (0, k_pad - f_in)))
        w1 = jnp.pad(w1, ((0, k_pad - f_in), (0, 0)))

    # --- Batch tiling: tile_b multiple of 8, pad batch to a multiple of it. ---
    tile_b = max(8, min(int(tile_b), _round_up(B, 8)))
    tile_b = _round_up(tile_b, 8)
    b_pad = _round_up(B, tile_b)
    if b_pad != B:
        x = jnp.pad(x, ((0, b_pad - B), (0, 0)))

    # --- Optional bf16 streaming of the dominant HBM traffic (x, weights). ---
    x = x.astype(stream_dtype)
    w1, w2, w3, w4 = (w.astype(stream_dtype) for w in (w1, w2, w3, w4))
    b1, b2, b3, b4 = (b.astype(jnp.float32) for b in (b1, b2, b3, b4))

    grid = (b_pad // tile_b,)

    def resident(shape):
        nd = len(shape)
        # Constant index_map: fetched once, stays in VMEM across all grid steps.
        return pl.BlockSpec(shape, lambda i: (0,) * nd)

    out = pl.pallas_call(
        mlp_kernel,
        out_shape=jax.ShapeDtypeStruct((b_pad, n_classes), jnp.float32),
        grid=grid,
        in_specs=[
            pl.BlockSpec((tile_b, k_pad), lambda i: (i, 0)),     # x: streamed
            resident(w1.shape), resident(b1.shape),
            resident(w2.shape), resident(b2.shape),
            resident(w3.shape), resident(b3.shape),
            resident(w4.shape), resident(b4.shape),
        ],
        out_specs=pl.BlockSpec((tile_b, n_classes), lambda i: (i, 0)),
        compiler_params=pltpu.CompilerParams(
            dimension_semantics=("parallel",),
        ),
    )(x, w1, b1, w2, b2, w3, b3, w4, b4)

    return out[:B]


def init_linear(key, fan_in, fan_out):
    # Mimics PyTorch's default U(-1/sqrt(fan_in), +1/sqrt(fan_in)) init.
    kw, kb = jax.random.split(key)
    bound = 1.0 / jnp.sqrt(jnp.float32(fan_in))
    w = jax.random.uniform(kw, (fan_in, fan_out), jnp.float32, -bound, bound)
    b = jax.random.uniform(kb, (1, fan_out), jnp.float32, -bound, bound)
    return w, b


def reference_forward(x, params):
    (w1, b1, w2, b2, w3, b3, w4, b4) = params
    h = jnp.maximum(x @ w1 + b1, 0.0)
    h = jnp.maximum(h @ w2 + b2, 0.0)
    h = jnp.maximum(h @ w3 + b3, 0.0)
    logits = h @ w4 + b4
    return jax.nn.log_softmax(logits, axis=1)


if __name__ == "__main__":
    key = jax.random.PRNGKey(0)
    kx, kx2, k1, k2, k3, k4 = jax.random.split(key, 6)

    w1, b1 = init_linear(k1, 267, 36)
    w2, b2 = init_linear(k2, 36, 36)
    w3, b3 = init_linear(k3, 36, 36)
    w4, b4 = init_linear(k4, 36, 2)
    params = (w1, b1, w2, b2, w3, b3, w4, b4)

    # Small batch (exercises batch padding: 4 -> 8).
    B = 4
    x = jax.random.normal(kx, (B, 267), jnp.float32)
    out = jax.block_until_ready(nn4_forward(x, params))
    ref = reference_forward(x, params)
    assert out.shape == (B, 2)
    assert jnp.allclose(out, ref, atol=1e-5, rtol=1e-5)

    # Multi-step grid (B=100 with tile_b=32 -> padded to 128, 4 grid steps).
    B2 = 100
    x2 = jax.random.normal(kx2, (B2, 267), jnp.float32)
    out2 = jax.block_until_ready(nn4_forward(x2, params, tile_b=32))
    ref2 = reference_forward(x2, params)
    assert out2.shape == (B2, 2)
    assert jnp.allclose(out2, ref2, atol=1e-5, rtol=1e-5)

    # bf16 streaming path (the v6e/v7x mem-bandwidth optimization).
    out_bf16 = jax.block_until_ready(
        nn4_forward(x2, params, tile_b=32, stream_dtype=jnp.bfloat16))
    assert out_bf16.shape == (B2, 2)
    assert bool(jnp.all(jnp.isfinite(out_bf16)))
    assert jnp.allclose(out_bf16, ref2, atol=1e-1, rtol=1e-1)

    print("KERNEL_OK")
</pallas_src>

<mosaic_0001>
module attributes {stable_mosaic.version = 11 : i64} {
  func.func @mlp_kernel(%arg0: i32, %arg1: memref<8x384xf32, #tpu.memory_space<vmem>>, %arg2: memref<384x36xf32, #tpu.memory_space<vmem>>, %arg3: memref<1x36xf32, #tpu.memory_space<vmem>>, %arg4: memref<36x36xf32, #tpu.memory_space<vmem>>, %arg5: memref<1x36xf32, #tpu.memory_space<vmem>>, %arg6: memref<36x36xf32, #tpu.memory_space<vmem>>, %arg7: memref<1x36xf32, #tpu.memory_space<vmem>>, %arg8: memref<36x2xf32, #tpu.memory_space<vmem>>, %arg9: memref<1x2xf32, #tpu.memory_space<vmem>>, %arg10: memref<8x2xf32, #tpu.memory_space<vmem>>) attributes {dimension_semantics = [#tpu.dimension_semantics<parallel>], iteration_bounds = array<i64: 1>, scalar_prefetch = 0 : i64, scratch_operands = 0 : i64, tpu.core_type = #tpu.core_type<tc>, window_params = [{transform_indices = @transform_0, window_bounds = array<i64: 8, 384>}, {pipeline_mode = #tpu.pipeline_mode<synchronous>, transform_indices = @transform_1, window_bounds = array<i64: 384, 36>}, {pipeline_mode = #tpu.pipeline_mode<synchronous>, transform_indices = @transform_2, window_bounds = array<i64: 1, 36>}, {pipeline_mode = #tpu.pipeline_mode<synchronous>, transform_indices = @transform_3, window_bounds = array<i64: 36, 36>}, {pipeline_mode = #tpu.pipeline_mode<synchronous>, transform_indices = @transform_4, window_bounds = array<i64: 1, 36>}, {pipeline_mode = #tpu.pipeline_mode<synchronous>, transform_indices = @transform_5, window_bounds = array<i64: 36, 36>}, {pipeline_mode = #tpu.pipeline_mode<synchronous>, transform_indices = @transform_6, window_bounds = array<i64: 1, 36>}, {pipeline_mode = #tpu.pipeline_mode<synchronous>, transform_indices = @transform_7, window_bounds = array<i64: 36, 2>}, {pipeline_mode = #tpu.pipeline_mode<synchronous>, transform_indices = @transform_8, window_bounds = array<i64: 1, 2>}, {transform_indices = @transform_9, window_bounds = array<i64: 8, 2>}]} {
    %c0 = arith.constant 0 : index
    %c0_0 = arith.constant 0 : index
    %0 = vector.load %arg1[%c0, %c0_0] : memref<8x384xf32, #tpu.memory_space<vmem>>, vector<8x384xf32>
    %c0_1 = arith.constant 0 : index
    %c0_2 = arith.constant 0 : index
    %1 = vector.load %arg2[%c0_1, %c0_2] : memref<384x36xf32, #tpu.memory_space<vmem>>, vector<384x36xf32>
    %cst = arith.constant dense<0.000000e+00> : vector<8x36xf32>
    %2 = tpu.matmul %0, %1, %cst {dimension_numbers = #tpu.dot_dimension_numbers<[1], [0], [0], [1], [0, 0, 1, 1], [], []>} : vector<8x384xf32>, vector<384x36xf32>, vector<8x36xf32> -> vector<8x36xf32>
    %c0_3 = arith.constant 0 : index
    %c0_4 = arith.constant 0 : index
    %3 = vector.load %arg3[%c0_3, %c0_4] : memref<1x36xf32, #tpu.memory_space<vmem>>, vector<1x36xf32>
    %4 = vector.broadcast %3 : vector<1x36xf32> to vector<8x36xf32>
    %5 = arith.addf %2, %4 : vector<8x36xf32>
    %cst_5 = arith.constant 0.000000e+00 : f32
    %6 = vector.broadcast %cst_5 : f32 to vector<8x36xf32>
    %7 = arith.maximumf %5, %6 : vector<8x36xf32>
    %c0_6 = arith.constant 0 : index
    %c0_7 = arith.constant 0 : index
    %8 = vector.load %arg4[%c0_6, %c0_7] : memref<36x36xf32, #tpu.memory_space<vmem>>, vector<36x36xf32>
    %cst_8 = arith.constant dense<0.000000e+00> : vector<8x36xf32>
    %9 = tpu.matmul %7, %8, %cst_8 {dimension_numbers = #tpu.dot_dimension_numbers<[1], [0], [0], [1], [0, 0, 1, 1], [], []>} : vector<8x36xf32>, vector<36x36xf32>, vector<8x36xf32> -> vector<8x36xf32>
    %c0_9 = arith.constant 0 : index
    %c0_10 = arith.constant 0 : index
    %10 = vector.load %arg5[%c0_9, %c0_10] : memref<1x36xf32, #tpu.memory_space<vmem>>, vector<1x36xf32>
    %11 = vector.broadcast %10 : vector<1x36xf32> to vector<8x36xf32>
    %12 = arith.addf %9, %11 : vector<8x36xf32>
    %cst_11 = arith.constant 0.000000e+00 : f32
    %13 = vector.broadcast %cst_11 : f32 to vector<8x36xf32>
    %14 = arith.maximumf %12, %13 : vector<8x36xf32>
    %c0_12 = arith.constant 0 : index
    %c0_13 = arith.constant 0 : index
    %15 = vector.load %arg6[%c0_12, %c0_13] : memref<36x36xf32, #tpu.memory_space<vmem>>, vector<36x36xf32>
    %cst_14 = arith.constant dense<0.000000e+00> : vector<8x36xf32>
    %16 = tpu.matmul %14, %15, %cst_14 {dimension_numbers = #tpu.dot_dimension_numbers<[1], [0], [0], [1], [0, 0, 1, 1], [], []>} : vector<8x36xf32>, vector<36x36xf32>, vector<8x36xf32> -> vector<8x36xf32>
    %c0_15 = arith.constant 0 : index
    %c0_16 = arith.constant 0 : index
    %17 = vector.load %arg7[%c0_15, %c0_16] : memref<1x36xf32, #tpu.memory_space<vmem>>, vector<1x36xf32>
    %18 = vector.broadcast %17 : vector<1x36xf32> to vector<8x36xf32>
    %19 = arith.addf %16, %18 : vector<8x36xf32>
    %cst_17 = arith.constant 0.000000e+00 : f32
    %20 = vector.broadcast %cst_17 : f32 to vector<8x36xf32>
    %21 = arith.maximumf %19, %20 : vector<8x36xf32>
    %c0_18 = arith.constant 0 : index
    %c0_19 = arith.constant 0 : index
    %22 = vector.load %arg8[%c0_18, %c0_19] : memref<36x2xf32, #tpu.memory_space<vmem>>, vector<36x2xf32>
    %cst_20 = arith.constant dense<0.000000e+00> : vector<8x2xf32>
    %23 = tpu.matmul %21, %22, %cst_20 {dimension_numbers = #tpu.dot_dimension_numbers<[1], [0], [0], [1], [0, 0, 1, 1], [], []>} : vector<8x36xf32>, vector<36x2xf32>, vector<8x2xf32> -> vector<8x2xf32>
    %c0_21 = arith.constant 0 : index
    %c0_22 = arith.constant 0 : index
    %24 = vector.load %arg9[%c0_21, %c0_22] : memref<1x2xf32, #tpu.memory_space<vmem>>, vector<1x2xf32>
    %25 = vector.broadcast %24 : vector<1x2xf32> to vector<8x2xf32>
    %26 = arith.addf %23, %25 : vector<8x2xf32>
    %cst_23 = arith.constant dense<0xFF800000> : vector<8xf32>
    %27 = vector.multi_reduction <maximumf>, %26, %cst_23 [1] : vector<8x2xf32> to vector<8xf32>
    %28 = vector.shape_cast %27 : vector<8xf32> to vector<8x1xf32>
    %29 = vector.broadcast %28 : vector<8x1xf32> to vector<8x2xf32>
    %30 = arith.subf %26, %29 : vector<8x2xf32>
    %31 = math.exp %30 : vector<8x2xf32>
    %cst_24 = arith.constant dense<0.000000e+00> : vector<8xf32>
    %32 = vector.multi_reduction <add>, %31, %cst_24 [1] : vector<8x2xf32> to vector<8xf32>
    %33 = vector.shape_cast %32 : vector<8xf32> to vector<8x1xf32>
    %34 = math.log %33 : vector<8x1xf32>
    %35 = vector.broadcast %34 : vector<8x1xf32> to vector<8x2xf32>
    %36 = arith.subf %30, %35 : vector<8x2xf32>
    %c0_25 = arith.constant 0 : index
    %c0_26 = arith.constant 0 : index
    %37 = vector.load %arg10[%c0_25, %c0_26] : memref<8x2xf32, #tpu.memory_space<vmem>>, vector<8x2xf32>
    tpu.vector_store %arg10[%c0_25, %c0_26], %36 {strides = array<i32>} : memref<8x2xf32, #tpu.memory_space<vmem>>, vector<8x2xf32>,
    return
  }
  func.func @transform_0(%arg0: i32) -> (i32, i32) {
    %c0_i32 = arith.constant 0 : i32
    %c0_i32_0 = arith.constant 0 : i32
    return %arg0, %c0_i32 : i32, i32
  }
  func.func @transform_1(%arg0: i32) -> (i32, i32) {
    %c0_i32 = arith.constant 0 : i32
    %c0_i32_0 = arith.constant 0 : i32
    %c0_i32_1 = arith.constant 0 : i32
    return %c0_i32, %c0_i32_0 : i32, i32
  }
  func.func @transform_2(%arg0: i32) -> (i32, i32) {
    %c0_i32 = arith.constant 0 : i32
    %c0_i32_0 = arith.constant 0 : i32
    %c0_i32_1 = arith.constant 0 : i32
    return %c0_i32, %c0_i32_0 : i32, i32
  }
  func.func @transform_3(%arg0: i32) -> (i32, i32) {
    %c0_i32 = arith.constant 0 : i32
    %c0_i32_0 = arith.constant 0 : i32
    %c0_i32_1 = arith.constant 0 : i32
    return %c0_i32, %c0_i32_0 : i32, i32
  }
  func.func @transform_4(%arg0: i32) -> (i32, i32) {
    %c0_i32 = arith.constant 0 : i32
    %c0_i32_0 = arith.constant 0 : i32
    %c0_i32_1 = arith.constant 0 : i32
    return %c0_i32, %c0_i32_0 : i32, i32
  }
  func.func @transform_5(%arg0: i32) -> (i32, i32) {
    %c0_i32 = arith.constant 0 : i32
    %c0_i32_0 = arith.constant 0 : i32
    %c0_i32_1 = arith.constant 0 : i32
    return %c0_i32, %c0_i32_0 : i32, i32
  }
  func.func @transform_6(%arg0: i32) -> (i32, i32) {
    %c0_i32 = arith.constant 0 : i32
    %c0_i32_0 = arith.constant 0 : i32
    %c0_i32_1 = arith.constant 0 : i32
    return %c0_i32, %c0_i32_0 : i32, i32
  }
  func.func @transform_7(%arg0: i32) -> (i32, i32) {
    %c0_i32 = arith.constant 0 : i32
    %c0_i32_0 = arith.constant 0 : i32
    %c0_i32_1 = arith.constant 0 : i32
    return %c0_i32, %c0_i32_0 : i32, i32
  }
  func.func @transform_8(%arg0: i32) -> (i32, i32) {
    %c0_i32 = arith.constant 0 : i32
    %c0_i32_0 = arith.constant 0 : i32
    %c0_i32_1 = arith.constant 0 : i32
    return %c0_i32, %c0_i32_0 : i32, i32
  }
  func.func @transform_9(%arg0: i32) -> (i32, i32) {
    %c0_i32 = arith.constant 0 : i32
    %c0_i32_0 = arith.constant 0 : i32
    return %arg0, %c0_i32 : i32, i32
  }
}

</mosaic_0001>

<bundles_post_ra>
// kernel: nn4_forward.1
= control target key start
LH: loop header
LB: loop body
LE: loop exit
PB: predicated region body
PF: predicated region fallthrough
CT: control target
= control target key end

     0   :  { %vm161_vm0 = vcmask 1043456   ;;  %vm157_vm1 = vcmask 293888   ;;  %vm257_vm2 = vcmask 15360   ;;  %s561_s1 = inlined_call_operand.vmem [shape: f32[384,36], index: 1, kind: input, shape index: {}]   ;;  %s562_s2 = inlined_call_operand.vmem [shape: f32[1,36], index: 2, kind: input, shape index: {}]   ;;  %s563_s0 = inlined_call_operand.vmem [shape: f32[8,384], index: 0, kind: input, shape index: {}]   ;;  %s564_s4 = inlined_call_operand.vmem [shape: f32[1,36], index: 4, kind: input, shape index: {}]   ;;  %s565_s3 = inlined_call_operand.vmem [shape: f32[36,36], index: 3, kind: input, shape index: {}]   ;;  %s566_s5 = inlined_call_operand.vmem [shape: f32[36,36], index: 5, kind: input, shape index: {}]   ;;  %s567_s6 = inlined_call_operand.vmem [shape: f32[1,36], index: 6, kind: input, shape index: {}]   ;;  %s568_s7 = inlined_call_operand.vmem [shape: f32[36,2], index: 7, kind: input, shape index: {}]   ;;  %s569_s8 = inlined_call_operand.vmem [shape: f32[1,2], index: 8, kind: input, shape index: {}]   ;;  %s570_s9 = inlined_call_operand.vmem [shape: f32[8,2], index: 9, kind: output, shape index: {}]  }
   0x1   :  { %v82_v0 = vld [vmem:[%s561_s1 + $0x178] sm:$0xff]  ;;  %v81_v2 = vld [vmem:[%s561_s1 + $0x170] sm:$0xff]  ;;  %v80_v5 = vld [vmem:[%s561_s1 + $0x168] sm:$0xff] }
   0x2   :  { %v50_v1 = vld [vmem:[%s561_s1 + $0x78] sm:$0xff]  ;;  %127 = vmatpush.msra.mxu2 %v82_v0  ;;  %v49_v3 = vld [vmem:[%s561_s1 + $0x70] sm:$0xff]  ;;  %v48_v6 = vld [vmem:[%s561_s1 + $0x68] sm:$0xff] }
   0x3   :  { %87 = vmatpush.msra.mxu0 %v50_v1  ;;  %v66_v4 = vld [vmem:[%s561_s1 + $0xf8] sm:$0xff]  ;;  %v65_v7 = vld [vmem:[%s561_s1 + $0xf0] sm:$0xff]  ;;  %v64_v8 = vld [vmem:[%s561_s1 + $0xe8] sm:$0xff] }
   0x4   :  { %107 = vmatpush.msra.mxu1 %v66_v4  ;;  %128 = vmatpush.msra.mxu2 %v81_v2  ;;  %v79_v9 = vld [vmem:[%s561_s1 + $0x160] sm:$0xff]  ;;  %v78_v12 = vld [vmem:[%s561_s1 + $0x158] sm:$0xff]  ;;  %v77_v15 = vld [vmem:[%s561_s1 + $0x150] sm:$0xff] }
   0x5   :  { %88 = vmatpush.msra.mxu0 %v49_v3  ;;  %v47_v10 = vld [vmem:[%s561_s1 + $0x60] sm:$0xff]  ;;  %v46_v13 = vld [vmem:[%s561_s1 + $0x58] sm:$0xff]  ;;  %v45_v16 = vld [vmem:[%s561_s1 + $0x50] sm:$0xff] }
   0x6   :  { %108 = vmatpush.msra.mxu1 %v65_v7  ;;  %129 = vmatpush.msra.mxu2 %v80_v5  ;;  %v63_v11 = vld [vmem:[%s561_s1 + $0xe0] sm:$0xff]  ;;  %v62_v14 = vld [vmem:[%s561_s1 + $0xd8] sm:$0xff]  ;;  %v61_v17 = vld [vmem:[%s561_s1 + $0xd0] sm:$0xff] }
   0x7   :  { %89 = vmatpush.msra.mxu0 %v48_v6  ;;  %v76_v18 = vld [vmem:[%s561_s1 + $0x148] sm:$0xff]  ;;  %v75_v21 = vld [vmem:[%s561_s1 + $0x140] sm:$0xff]  ;;  %v74_v24 = vld [vmem:[%s561_s1 + $0x138] sm:$0xff] }
   0x8   :  { %109 = vmatpush.msra.mxu1 %v64_v8  ;;  %130 = vmatpush.msra.mxu2 %v79_v9  ;;  %v44_v19 = vld [vmem:[%s561_s1 + $0x48] sm:$0xff]  ;;  %v43_v22 = vld [vmem:[%s561_s1 + $0x40] sm:$0xff]  ;;  %v42_v25 = vld [vmem:[%s561_s1 + $0x38] sm:$0xff] }
   0x9   :  { %90 = vmatpush.msra.mxu0 %v47_v10  ;;  %v60_v20 = vld [vmem:[%s561_s1 + $0xc8] sm:$0xff]  ;;  %v59_v23 = vld [vmem:[%s561_s1 + $0xc0] sm:$0xff]  ;;  %v58_v26 = vld [vmem:[%s561_s1 + $0xb8] sm:$0xff] }
   0xa   :  { %110 = vmatpush.msra.mxu1 %v63_v11  ;;  %131 = vmatpush.msra.mxu2 %v78_v12  ;;  %v73_v27 = vld [vmem:[%s561_s1 + $0x130] sm:$0xff]  ;;  %v72_v30 = vld [vmem:[%s561_s1 + $0x128] sm:$0xff]  ;;  %v71_v33 = vld [vmem:[%s561_s1 + $0x120] sm:$0xff] }
   0xb   :  { %91 = vmatpush.msra.mxu0 %v46_v13  ;;  %v41_v28 = vld [vmem:[%s561_s1 + $0x30] sm:$0xff]  ;;  %v40_v31 = vld [vmem:[%s561_s1 + $0x28] sm:$0xff]  ;;  %v39_v34 = vld [vmem:[%s561_s1 + $0x20] sm:$0xff] }
   0xc   :  { %111 = vmatpush.msra.mxu1 %v62_v14  ;;  %132 = vmatpush.msra.mxu2 %v77_v15  ;;  %v57_v29 = vld [vmem:[%s561_s1 + $0xb0] sm:$0xff]  ;;  %v56_v32 = vld [vmem:[%s561_s1 + $0xa8] sm:$0xff]  ;;  %v55_v35 = vld [vmem:[%s561_s1 + $0xa0] sm:$0xff] }
   0xd   :  { %92 = vmatpush.msra.mxu0 %v45_v16  ;;  %v70_v36 = vld [vmem:[%s561_s1 + $0x118] sm:$0xff]  ;;  %v69_v39 = vld [vmem:[%s561_s1 + $0x110] sm:$0xff]  ;;  %v68_v42 = vld [vmem:[%s561_s1 + $0x108] sm:$0xff] }
   0xe   :  { %112 = vmatpush.msra.mxu1 %v61_v17  ;;  %133 = vmatpush.msra.mxu2 %v76_v18  ;;  %v38_v37 = vld [vmem:[%s561_s1 + $0x18] sm:$0xff]  ;;  %v37_v40 = vld [vmem:[%s561_s1 + $0x10] sm:$0xff]  ;;  %v36_v43 = vld [vmem:[%s561_s1 + $0x8] sm:$0xff] }
   0xf   :  { %93 = vmatpush.msra.mxu0 %v44_v19  ;;  %v54_v38 = vld [vmem:[%s561_s1 + $0x98] sm:$0xff]  ;;  %v53_v41 = vld [vmem:[%s561_s1 + $0x90] sm:$0xff]  ;;  %v52_v44 = vld [vmem:[%s561_s1 + $0x88] sm:$0xff] }
  0x10   :  { %113 = vmatpush.msra.mxu1 %v60_v20  ;;  %134 = vmatpush.msra.mxu2 %v75_v21  ;;  %v67_v45 = vld [vmem:[%s561_s1 + $0x100] sm:$0xff]  ;;  %v34_v47 = vld [vmem:[%s563_s0 + $0x10] sm:$0xff]  ;;  %v33_v50 = vld [vmem:[%s563_s0 + $0x8] sm:$0xff] }
  0x11   :  { %94 = vmatpush.msra.mxu0 %v43_v22  ;;  %v35_v46 = vld [vmem:[%s561_s1] sm:$0xff]  ;;  %v151_v52 = vld [vmem:[%s565_s3 + $0x18] sm:$0xff]  ;;  %v150_v53 = vld [vmem:[%s565_s3 + $0x10] sm:$0xff] }
  0x12   :  { %114 = vmatpush.msra.mxu1 %v59_v23  ;;  %135 = vmatpush.msra.mxu2 %v74_v24  ;;  %v32_v48 = vld [vmem:[%s563_s0] sm:$0xff]  ;;  %v149_v54 = vld [vmem:[%s565_s3 + $0x8] sm:$0xff]  ;;  %v189_v57 = vld [vmem:[%s566_s5 + $0x18] sm:$0xff] }
  0x13   :  { %95 = vmatpush.msra.mxu0 %v42_v25  ;;  %v51_v49 = vld [vmem:[%s561_s1 + $0x80] sm:$0xff]  ;;  %v188_v2 = vld [vmem:[%s566_s5 + $0x10] sm:$0xff]  ;;  %v187_v3 = vld [vmem:[%s566_s5 + $0x8] sm:$0xff] }
  0x14   :  { %115 = vmatpush.msra.mxu1 %v58_v26  ;;  %136 = vmatpush.msra.mxu2 %v73_v27  ;;  %v152_v51 = vld [vmem:[%s565_s3 + $0x20] sm:$0xf]  ;;  %v225_v6 = vld [vmem:[%s568_s7 + $0x18] sm:$0xff]  ;;  %v224_v11 = vld [vmem:[%s568_s7 + $0x10] sm:$0xff] }
  0x15   :  { %96 = vmatpush.msra.mxu0 %v41_v28  ;;  %275 = vmatpush.msk.msra.mxu3 %vm161_vm0, %v152_v51  ;;  %v148_v55 = vld [vmem:[%s565_s3] sm:$0xff]  ;;  %v223_v12 = vld [vmem:[%s568_s7 + $0x8] sm:$0xff] }
  0x16   :  { %116 = vmatpush.msra.mxu1 %v57_v29  ;;  %137 = vmatpush.msra.mxu2 %v72_v30  ;;  %v190_v56 = vld [vmem:[%s566_s5 + $0x20] sm:$0xf] }
  0x17   :  { %97 = vmatpush.msra.mxu0 %v40_v31  ;;  %177 = vmatpush.msra.mxu3 %v151_v52  ;;  %v281_v58 = vld [vmem:[%s562_s2] ss:$0 sm:$0xff] }
  0x18   :  { %117 = vmatpush.msra.mxu1 %v56_v32  ;;  %138 = vmatpush.msra.mxu2 %v71_v33  ;;  %v186_v4 = vld [vmem:[%s566_s5] sm:$0xff] }
  0x19   :  { %98 = vmatpush.msra.mxu0 %v39_v34  ;;  %178 = vmatpush.msra.mxu3 %v150_v53  ;;  %v226_v5 = vld [vmem:[%s568_s7 + $0x20] sm:$0xf] }
  0x1a   :  { %118 = vmatpush.msra.mxu1 %v55_v35  ;;  %139 = vmatpush.msra.mxu2 %v70_v36  ;;  %v282_v7 = vld [vmem:[%s564_s4] ss:$0 sm:$0xff] }
  0x1b   :  { %99 = vmatpush.msra.mxu0 %v38_v37  ;;  %179 = vmatpush.msra.mxu3 %v149_v54  ;;  %v222_v13 = vld [vmem:[%s568_s7] sm:$0xff] }
  0x1c   :  { %119 = vmatpush.msra.mxu1 %v54_v38  ;;  %140 = vmatpush.msra.mxu2 %v69_v39  ;;  %v283_v14 = vld [vmem:[%s567_s6] ss:$0 sm:$0xff] }
  0x1d   :  { %100 = vmatpush.msra.mxu0 %v37_v40  ;;  %180 = vmatpush.msra.mxu3 %v148_v55  ;;  %v284_v18 = vld [vmem:[%s569_s8] ss:$0 sm:$0xff] }
  0x1e   :  { %120 = vmatpush.msra.mxu1 %v53_v41  ;;  %141 = vmatpush.msra.mxu2 %v68_v42 }
  0x1f   :  { %101 = vmatpush.msra.mxu0 %v36_v43  ;;  %277 = vmatpush.msk.msrb.mxu3 %vm161_vm0, %v190_v56 }
  0x20   :  { %121 = vmatpush.msra.mxu1 %v52_v44  ;;  %142 = vmatpush.msra.mxu2 %v67_v45 }
  0x21   :  { %102 = vmatpush.msra.mxu0 %v35_v46  ;;  %143 = vmatmul.f32.vlgmr.msra.gmra.mxu2 %v34_v47 }
  0x22   :  { %103 = vmatmul.f32.vlgmr.msra.gmra.mxu0 %v32_v48  ;;  %122 = vmatpush.msra.mxu1 %v51_v49 }
  0x23   :  { %123 = vmatmul.f32.vlgmr.msra.gmra.mxu1 %v33_v50  ;;  %213 = vmatpush.msrb.mxu3 %v189_v57 }
  0x25   :  { %214 = vmatpush.msrb.mxu3 %v188_v2 }
  0x27   :  { %215 = vmatpush.msrb.mxu3 %v187_v3 }
  0x29   :  { %216 = vmatpush.msrb.mxu3 %v186_v4 }
  0x9f   :  { %v104_v59 = vpop.f32.mrf.mxu0 }
  0xa0   :  { %v105_v60 = vadd.f32 %v281_v58, %v104_v59  ;;  %v124_v61 = vpop.f32.mrf.mxu1 }
  0xa2   :  { %v125_v62 = vadd.f32 %v124_v61, %v105_v60 }
  0xa4   :  { %v144_v63 = vpop.f32.mrf.mxu2 }
  0xa5   :  { %v145_v0 = vadd.f32 %v144_v63, %v125_v62 }
  0xa7   :  { %v147_v1 = vmax.f32 %v145_v0, 0.0 }
  0xa9   :  { %276 = vmatmul.msk.f32.vlgmr.msra.gmra.mxu3 %vm157_vm1, %v147_v1 }
  0xaa   :  { %279 = vmatpush.msk.msra.mxu3 %vm161_vm0, %v226_v5 }
  0xac   :  { %249 = vmatpush.msra.mxu3 %v225_v6 }
  0xae   :  { %250 = vmatpush.msra.mxu3 %v224_v11 }
  0xb0   :  { %251 = vmatpush.msra.mxu3 %v223_v12 }
  0xb2   :  { %252 = vmatpush.msra.mxu3 %v222_v13 }
 0x12c   :  { %v182_v8 = vpop.f32.mrf.mxu3 }
 0x12d   :  { %v183_v9 = vadd.f32 %v282_v7, %v182_v8 }
 0x12f   :  { %v185_v10 = vmax.f32 %v183_v9, 0.0 }
 0x131   :  { %278 = vmatmul.msk.f32.vlgmr.msrb.gmra.mxu3 %vm157_vm1, %v185_v10 }
 0x1b4   :  { %v218_v15 = vpop.f32.mrf.mxu3 }
 0x1b5   :  { %v219_v16 = vadd.f32 %v283_v14, %v218_v15 }
 0x1b7   :  { %v221_v17 = vmax.f32 %v219_v16, 0.0 }
 0x1b9   :  { %280 = vmatmul.msk.f32.vlgmr.msra.gmra.mxu3 %vm157_vm1, %v221_v17 }
 0x23c   :  { %v254_v19 = vpop.f32.mrf.mxu3 }
 0x23d   :  { %v255_v20 = vadd.f32 %v284_v18, %v254_v19 }
 0x23f   :  { %v258_v21 = vsel %vm257_vm2, %v255_v20, -inf }
 0x240   :  { %259 = vmax.xlane.f32.xlu0 %v258_v21 }
 0x2b3   :  { %v260_v22 = vpop.xlane.xlu0 %259 }
 0x2b4   :  { %v261_v23 = vsub.f32 %v255_v20, %v260_v22 }
 0x2b6   :  { %v262_v24 = vmul.f32 1.442695, %v261_v23 }
 0x2b8   :  { %285 = vpow2.f32 %v262_v24 }
 0x2be   :  { %v286_v25 = vpop.eup %285 }
 0x2bf   :  { %v264_v26 = vsel %vm257_vm2, %v286_v25, 0.0 }
 0x2c0   :  { %265 = vadd.xlane.f32.xlu0 %v264_v26 }
 0x333   :  { %v266_v27 = vpop.xlane.xlu0 %265 }
 0x334   :  { %287 = vlog2.f32 %v266_v27 }
 0x33a   :  { %v288_v28 = vpop.eup %287 }
 0x33b   :  { %v268_v29 = vmul.f32 0.6931472, %v288_v28 }
 0x33d   :  { %v269_v30 = vsub.f32 %v261_v23, %v268_v29 }
 0x33f   :  { %270 = vst.msk [vmem:[%s570_s9] sm:$0xff] %vm257_vm2, %v269_v30 }

</bundles_post_ra>
